<compile_context>
chip_gen: v5e
topology: v5e:2x2
jax: 0.10.0
libtpu: 0.0.40
codegen_flags: <defaults>
</compile_context>

<pallas_src>
import jax
import jax.numpy as jnp
from jax.experimental import pallas as pl
from jax.experimental.pallas import tpu as pltpu


def lstm_regressor_kernel(x_ref, w_ref, b_ref, wfc_ref, bfc_ref, out_ref):
    B, T, I = x_ref.shape
    H = wfc_ref.shape[1]

    w = w_ref[...]                                     # (I+H, 4H), resident
    bias = jnp.broadcast_to(b_ref[...], (B, 4 * H))    # hoisted out of the loop

    h = jnp.zeros((B, H), jnp.float32)
    c = jnp.zeros((B, H), jnp.float32)

    # T is small and static: fully unroll with static timestep slices so the
    # compiler sees one flat schedule (no per-step grid/DMA boundaries).
    for t in range(T):
        x_t = x_ref[:, t, :]                                 # (B, I) static slice
        xh = jnp.concatenate([x_t, h], axis=-1)              # (B, I+H)
        gates = (jnp.dot(xh, w, preferred_element_type=jnp.float32)
                 + bias)                                     # (B, 4H), one MXU pass

        sg = jax.nn.sigmoid(gates)   # full-tile EUP
        tg = jnp.tanh(gates)         # full-tile EUP
        i_g = sg[:, 0 * H:1 * H]
        f_g = sg[:, 1 * H:2 * H]
        g_g = tg[:, 2 * H:3 * H]
        o_g = sg[:, 3 * H:4 * H]

        c = f_g * c + i_g * g_g
        h = o_g * jnp.tanh(c)

    # fc(hidden -> 1) on the last hidden state: VPU multiply + lane reduction
    # (an N=1 MXU matmul would waste the systolic array and MRF drain latency).
    out_ref[...] = (jnp.sum(h * wfc_ref[...], axis=-1, keepdims=True)
                    + bfc_ref[...]).astype(out_ref.dtype)


def lstm_regressor(x, w_ih, w_hh, b_ih, b_hh, w_fc, b_fc):
    """x: (B, T, I) batch-first float32. Returns (B, 1) = fc(LSTM(x)[:, -1, :])."""
    B, T, I = x.shape
    H = w_hh.shape[1]

    # Fuse the two gate weight matrices: [x_t, h] @ (I+H, 4H).
    w_fused = jnp.concatenate([w_ih.T, w_hh.T], axis=0).astype(jnp.float32)  # (I+H, 4H)
    bias = (b_ih + b_hh).reshape(1, 4 * H).astype(jnp.float32)               # (1, 4H)
    wfc_row = w_fc.reshape(1, H).astype(jnp.float32)                         # (1, H)
    bfc = b_fc.reshape(1, 1).astype(jnp.float32)                             # (1, 1)

    vmem = pl.BlockSpec(memory_space=pltpu.MemorySpace.VMEM)
    return pl.pallas_call(
        lstm_regressor_kernel,
        out_shape=jax.ShapeDtypeStruct((B, 1), jnp.float32),
        in_specs=[vmem, vmem, vmem, vmem, vmem],
        out_specs=vmem,
    )(x.astype(jnp.float32), w_fused, bias, wfc_row, bfc)


def lstm_regressor_ref(x, w_ih, w_hh, b_ih, b_hh, w_fc, b_fc):
    """Pure-JAX reference matching PyTorch nn.LSTM + nn.Linear semantics."""
    B, T, I = x.shape
    H = w_hh.shape[1]

    def step(carry, x_t):
        h, c = carry
        gates = x_t @ w_ih.T + b_ih + h @ w_hh.T + b_hh
        i = jax.nn.sigmoid(gates[:, 0 * H:1 * H])
        f = jax.nn.sigmoid(gates[:, 1 * H:2 * H])
        g = jnp.tanh(gates[:, 2 * H:3 * H])
        o = jax.nn.sigmoid(gates[:, 3 * H:4 * H])
        c = f * c + i * g
        h = o * jnp.tanh(c)
        return (h, c), None

    h0 = jnp.zeros((B, H), jnp.float32)
    c0 = jnp.zeros((B, H), jnp.float32)
    (hT, _), _ = jax.lax.scan(step, (h0, c0), jnp.transpose(x, (1, 0, 2)))
    return hT @ w_fc.T + b_fc


if __name__ == "__main__":
    # Small shapes consistent with the module's forward (batch=8, seq=8,
    # input=16, hidden=32); 4H = 128 fills one vreg lane width.
    B, T, I, H = 8, 8, 16, 32

    key = jax.random.PRNGKey(0)
    ks = jax.random.split(key, 7)
    bound = 1.0 / jnp.sqrt(H)  # PyTorch default uniform init scale

    x = jax.random.normal(ks[0], (B, T, I), jnp.float32)
    w_ih = jax.random.uniform(ks[1], (4 * H, I), jnp.float32, -bound, bound)
    w_hh = jax.random.uniform(ks[2], (4 * H, H), jnp.float32, -bound, bound)
    b_ih = jax.random.uniform(ks[3], (4 * H,), jnp.float32, -bound, bound)
    b_hh = jax.random.uniform(ks[4], (4 * H,), jnp.float32, -bound, bound)
    w_fc = jax.random.uniform(ks[5], (1, H), jnp.float32, -bound, bound)
    b_fc = jax.random.uniform(ks[6], (1,), jnp.float32, -bound, bound)

    out = lstm_regressor(x, w_ih, w_hh, b_ih, b_hh, w_fc, b_fc)
    out = jax.block_until_ready(out)

    ref = lstm_regressor_ref(x, w_ih, w_hh, b_ih, b_hh, w_fc, b_fc)
    assert out.shape == (B, 1), out.shape
    assert jnp.allclose(out, ref, atol=1e-5, rtol=1e-5), (out, ref)

    print("KERNEL_OK")
</pallas_src>

<mosaic_0001>
module attributes {stable_mosaic.version = 11 : i64} {
  func.func @lstm_regressor_kernel(%arg0: memref<8x8x16xf32, #tpu.memory_space<vmem>>, %arg1: memref<48x128xf32, #tpu.memory_space<vmem>>, %arg2: memref<1x128xf32, #tpu.memory_space<vmem>>, %arg3: memref<1x32xf32, #tpu.memory_space<vmem>>, %arg4: memref<1x1xf32, #tpu.memory_space<vmem>>, %arg5: memref<8x1xf32, #tpu.memory_space<vmem>>) attributes {dimension_semantics = [], scalar_prefetch = 0 : i64, scratch_operands = 0 : i64, tpu.core_type = #tpu.core_type<tc>} {
    %c0 = arith.constant 0 : index
    %c0_0 = arith.constant 0 : index
    %0 = vector.load %arg1[%c0, %c0_0] : memref<48x128xf32, #tpu.memory_space<vmem>>, vector<48x128xf32>
    %c0_1 = arith.constant 0 : index
    %c0_2 = arith.constant 0 : index
    %1 = vector.load %arg2[%c0_1, %c0_2] : memref<1x128xf32, #tpu.memory_space<vmem>>, vector<1x128xf32>
    %2 = vector.shape_cast %1 : vector<1x128xf32> to vector<1x128xf32>
    %3 = vector.broadcast %2 : vector<1x128xf32> to vector<8x128xf32>
    %cst = arith.constant 0.000000e+00 : f32
    %4 = vector.broadcast %cst : f32 to vector<8x32xf32>
    %cst_3 = arith.constant 0.000000e+00 : f32
    %5 = vector.broadcast %cst_3 : f32 to vector<8x32xf32>
    %c0_4 = arith.constant 0 : index
    %c0_5 = arith.constant 0 : index
    %c0_6 = arith.constant 0 : index
    %6 = vector.load %arg0[%c0_4, %c0_5, %c0_6] : memref<8x8x16xf32, #tpu.memory_space<vmem>>, vector<8x1x16xf32>
    %7 = vector.shape_cast %6 : vector<8x1x16xf32> to vector<8x16xf32>
    %8 = tpu.concatenate %7, %4 in 1 : vector<8x16xf32>, vector<8x32xf32> -> vector<8x48xf32>
    %cst_7 = arith.constant dense<0.000000e+00> : vector<8x128xf32>
    %9 = tpu.matmul %8, %0, %cst_7 {dimension_numbers = #tpu.dot_dimension_numbers<[1], [0], [0], [1], [0, 0, 1, 1], [], []>} : vector<8x48xf32>, vector<48x128xf32>, vector<8x128xf32> -> vector<8x128xf32>
    %10 = arith.addf %9, %3 : vector<8x128xf32>
    %11 = arith.negf %10 : vector<8x128xf32>
    %12 = math.exp %11 : vector<8x128xf32>
    %cst_8 = arith.constant 1.000000e+00 : f32
    %13 = vector.broadcast %cst_8 : f32 to vector<8x128xf32>
    %14 = arith.addf %13, %12 : vector<8x128xf32>
    %15 = arith.divf %13, %14 : vector<8x128xf32>
    %16 = math.tanh %10 : vector<8x128xf32>
    %17 = vector.extract_strided_slice %15 {offsets = [0, 0], sizes = [8, 32], strides = [1, 1]} : vector<8x128xf32> to vector<8x32xf32>
    %18 = vector.extract_strided_slice %15 {offsets = [0, 32], sizes = [8, 32], strides = [1, 1]} : vector<8x128xf32> to vector<8x32xf32>
    %19 = vector.extract_strided_slice %16 {offsets = [0, 64], sizes = [8, 32], strides = [1, 1]} : vector<8x128xf32> to vector<8x32xf32>
    %20 = vector.extract_strided_slice %15 {offsets = [0, 96], sizes = [8, 32], strides = [1, 1]} : vector<8x128xf32> to vector<8x32xf32>
    %21 = arith.mulf %18, %5 : vector<8x32xf32>
    %22 = arith.mulf %17, %19 : vector<8x32xf32>
    %23 = arith.addf %21, %22 : vector<8x32xf32>
    %24 = math.tanh %23 : vector<8x32xf32>
    %25 = arith.mulf %20, %24 : vector<8x32xf32>
    %c0_9 = arith.constant 0 : index
    %c1 = arith.constant 1 : index
    %c0_10 = arith.constant 0 : index
    %26 = vector.load %arg0[%c0_9, %c1, %c0_10] : memref<8x8x16xf32, #tpu.memory_space<vmem>>, vector<8x1x16xf32>
    %27 = vector.shape_cast %26 : vector<8x1x16xf32> to vector<8x16xf32>
    %28 = tpu.concatenate %27, %25 in 1 : vector<8x16xf32>, vector<8x32xf32> -> vector<8x48xf32>
    %cst_11 = arith.constant dense<0.000000e+00> : vector<8x128xf32>
    %29 = tpu.matmul %28, %0, %cst_11 {dimension_numbers = #tpu.dot_dimension_numbers<[1], [0], [0], [1], [0, 0, 1, 1], [], []>} : vector<8x48xf32>, vector<48x128xf32>, vector<8x128xf32> -> vector<8x128xf32>
    %30 = arith.addf %29, %3 : vector<8x128xf32>
    %31 = arith.negf %30 : vector<8x128xf32>
    %32 = math.exp %31 : vector<8x128xf32>
    %cst_12 = arith.constant 1.000000e+00 : f32
    %33 = vector.broadcast %cst_12 : f32 to vector<8x128xf32>
    %34 = arith.addf %33, %32 : vector<8x128xf32>
    %35 = arith.divf %33, %34 : vector<8x128xf32>
    %36 = math.tanh %30 : vector<8x128xf32>
    %37 = vector.extract_strided_slice %35 {offsets = [0, 0], sizes = [8, 32], strides = [1, 1]} : vector<8x128xf32> to vector<8x32xf32>
    %38 = vector.extract_strided_slice %35 {offsets = [0, 32], sizes = [8, 32], strides = [1, 1]} : vector<8x128xf32> to vector<8x32xf32>
    %39 = vector.extract_strided_slice %36 {offsets = [0, 64], sizes = [8, 32], strides = [1, 1]} : vector<8x128xf32> to vector<8x32xf32>
    %40 = vector.extract_strided_slice %35 {offsets = [0, 96], sizes = [8, 32], strides = [1, 1]} : vector<8x128xf32> to vector<8x32xf32>
    %41 = arith.mulf %38, %23 : vector<8x32xf32>
    %42 = arith.mulf %37, %39 : vector<8x32xf32>
    %43 = arith.addf %41, %42 : vector<8x32xf32>
    %44 = math.tanh %43 : vector<8x32xf32>
    %45 = arith.mulf %40, %44 : vector<8x32xf32>
    %c0_13 = arith.constant 0 : index
    %c2 = arith.constant 2 : index
    %c0_14 = arith.constant 0 : index
    %46 = vector.load %arg0[%c0_13, %c2, %c0_14] : memref<8x8x16xf32, #tpu.memory_space<vmem>>, vector<8x1x16xf32>
    %47 = vector.shape_cast %46 : vector<8x1x16xf32> to vector<8x16xf32>
    %48 = tpu.concatenate %47, %45 in 1 : vector<8x16xf32>, vector<8x32xf32> -> vector<8x48xf32>
    %cst_15 = arith.constant dense<0.000000e+00> : vector<8x128xf32>
    %49 = tpu.matmul %48, %0, %cst_15 {dimension_numbers = #tpu.dot_dimension_numbers<[1], [0], [0], [1], [0, 0, 1, 1], [], []>} : vector<8x48xf32>, vector<48x128xf32>, vector<8x128xf32> -> vector<8x128xf32>
    %50 = arith.addf %49, %3 : vector<8x128xf32>
    %51 = arith.negf %50 : vector<8x128xf32>
    %52 = math.exp %51 : vector<8x128xf32>
    %cst_16 = arith.constant 1.000000e+00 : f32
    %53 = vector.broadcast %cst_16 : f32 to vector<8x128xf32>
    %54 = arith.addf %53, %52 : vector<8x128xf32>
    %55 = arith.divf %53, %54 : vector<8x128xf32>
    %56 = math.tanh %50 : vector<8x128xf32>
    %57 = vector.extract_strided_slice %55 {offsets = [0, 0], sizes = [8, 32], strides = [1, 1]} : vector<8x128xf32> to vector<8x32xf32>
    %58 = vector.extract_strided_slice %55 {offsets = [0, 32], sizes = [8, 32], strides = [1, 1]} : vector<8x128xf32> to vector<8x32xf32>
    %59 = vector.extract_strided_slice %56 {offsets = [0, 64], sizes = [8, 32], strides = [1, 1]} : vector<8x128xf32> to vector<8x32xf32>
    %60 = vector.extract_strided_slice %55 {offsets = [0, 96], sizes = [8, 32], strides = [1, 1]} : vector<8x128xf32> to vector<8x32xf32>
    %61 = arith.mulf %58, %43 : vector<8x32xf32>
    %62 = arith.mulf %57, %59 : vector<8x32xf32>
    %63 = arith.addf %61, %62 : vector<8x32xf32>
    %64 = math.tanh %63 : vector<8x32xf32>
    %65 = arith.mulf %60, %64 : vector<8x32xf32>
    %c0_17 = arith.constant 0 : index
    %c3 = arith.constant 3 : index
    %c0_18 = arith.constant 0 : index
    %66 = vector.load %arg0[%c0_17, %c3, %c0_18] : memref<8x8x16xf32, #tpu.memory_space<vmem>>, vector<8x1x16xf32>
    %67 = vector.shape_cast %66 : vector<8x1x16xf32> to vector<8x16xf32>
    %68 = tpu.concatenate %67, %65 in 1 : vector<8x16xf32>, vector<8x32xf32> -> vector<8x48xf32>
    %cst_19 = arith.constant dense<0.000000e+00> : vector<8x128xf32>
    %69 = tpu.matmul %68, %0, %cst_19 {dimension_numbers = #tpu.dot_dimension_numbers<[1], [0], [0], [1], [0, 0, 1, 1], [], []>} : vector<8x48xf32>, vector<48x128xf32>, vector<8x128xf32> -> vector<8x128xf32>
    %70 = arith.addf %69, %3 : vector<8x128xf32>
    %71 = arith.negf %70 : vector<8x128xf32>
    %72 = math.exp %71 : vector<8x128xf32>
    %cst_20 = arith.constant 1.000000e+00 : f32
    %73 = vector.broadcast %cst_20 : f32 to vector<8x128xf32>
    %74 = arith.addf %73, %72 : vector<8x128xf32>
    %75 = arith.divf %73, %74 : vector<8x128xf32>
    %76 = math.tanh %70 : vector<8x128xf32>
    %77 = vector.extract_strided_slice %75 {offsets = [0, 0], sizes = [8, 32], strides = [1, 1]} : vector<8x128xf32> to vector<8x32xf32>
    %78 = vector.extract_strided_slice %75 {offsets = [0, 32], sizes = [8, 32], strides = [1, 1]} : vector<8x128xf32> to vector<8x32xf32>
    %79 = vector.extract_strided_slice %76 {offsets = [0, 64], sizes = [8, 32], strides = [1, 1]} : vector<8x128xf32> to vector<8x32xf32>
    %80 = vector.extract_strided_slice %75 {offsets = [0, 96], sizes = [8, 32], strides = [1, 1]} : vector<8x128xf32> to vector<8x32xf32>
    %81 = arith.mulf %78, %63 : vector<8x32xf32>
    %82 = arith.mulf %77, %79 : vector<8x32xf32>
    %83 = arith.addf %81, %82 : vector<8x32xf32>
    %84 = math.tanh %83 : vector<8x32xf32>
    %85 = arith.mulf %80, %84 : vector<8x32xf32>
    %c0_21 = arith.constant 0 : index
    %c4 = arith.constant 4 : index
    %c0_22 = arith.constant 0 : index
    %86 = vector.load %arg0[%c0_21, %c4, %c0_22] : memref<8x8x16xf32, #tpu.memory_space<vmem>>, vector<8x1x16xf32>
    %87 = vector.shape_cast %86 : vector<8x1x16xf32> to vector<8x16xf32>
    %88 = tpu.concatenate %87, %85 in 1 : vector<8x16xf32>, vector<8x32xf32> -> vector<8x48xf32>
    %cst_23 = arith.constant dense<0.000000e+00> : vector<8x128xf32>
    %89 = tpu.matmul %88, %0, %cst_23 {dimension_numbers = #tpu.dot_dimension_numbers<[1], [0], [0], [1], [0, 0, 1, 1], [], []>} : vector<8x48xf32>, vector<48x128xf32>, vector<8x128xf32> -> vector<8x128xf32>
    %90 = arith.addf %89, %3 : vector<8x128xf32>
    %91 = arith.negf %90 : vector<8x128xf32>
    %92 = math.exp %91 : vector<8x128xf32>
    %cst_24 = arith.constant 1.000000e+00 : f32
    %93 = vector.broadcast %cst_24 : f32 to vector<8x128xf32>
    %94 = arith.addf %93, %92 : vector<8x128xf32>
    %95 = arith.divf %93, %94 : vector<8x128xf32>
    %96 = math.tanh %90 : vector<8x128xf32>
    %97 = vector.extract_strided_slice %95 {offsets = [0, 0], sizes = [8, 32], strides = [1, 1]} : vector<8x128xf32> to vector<8x32xf32>
    %98 = vector.extract_strided_slice %95 {offsets = [0, 32], sizes = [8, 32], strides = [1, 1]} : vector<8x128xf32> to vector<8x32xf32>
    %99 = vector.extract_strided_slice %96 {offsets = [0, 64], sizes = [8, 32], strides = [1, 1]} : vector<8x128xf32> to vector<8x32xf32>
    %100 = vector.extract_strided_slice %95 {offsets = [0, 96], sizes = [8, 32], strides = [1, 1]} : vector<8x128xf32> to vector<8x32xf32>
    %101 = arith.mulf %98, %83 : vector<8x32xf32>
    %102 = arith.mulf %97, %99 : vector<8x32xf32>
    %103 = arith.addf %101, %102 : vector<8x32xf32>
    %104 = math.tanh %103 : vector<8x32xf32>
    %105 = arith.mulf %100, %104 : vector<8x32xf32>
    %c0_25 = arith.constant 0 : index
    %c5 = arith.constant 5 : index
    %c0_26 = arith.constant 0 : index
    %106 = vector.load %arg0[%c0_25, %c5, %c0_26] : memref<8x8x16xf32, #tpu.memory_space<vmem>>, vector<8x1x16xf32>
    %107 = vector.shape_cast %106 : vector<8x1x16xf32> to vector<8x16xf32>
    %108 = tpu.concatenate %107, %105 in 1 : vector<8x16xf32>, vector<8x32xf32> -> vector<8x48xf32>
    %cst_27 = arith.constant dense<0.000000e+00> : vector<8x128xf32>
    %109 = tpu.matmul %108, %0, %cst_27 {dimension_numbers = #tpu.dot_dimension_numbers<[1], [0], [0], [1], [0, 0, 1, 1], [], []>} : vector<8x48xf32>, vector<48x128xf32>, vector<8x128xf32> -> vector<8x128xf32>
    %110 = arith.addf %109, %3 : vector<8x128xf32>
    %111 = arith.negf %110 : vector<8x128xf32>
    %112 = math.exp %111 : vector<8x128xf32>
    %cst_28 = arith.constant 1.000000e+00 : f32
    %113 = vector.broadcast %cst_28 : f32 to vector<8x128xf32>
    %114 = arith.addf %113, %112 : vector<8x128xf32>
    %115 = arith.divf %113, %114 : vector<8x128xf32>
    %116 = math.tanh %110 : vector<8x128xf32>
    %117 = vector.extract_strided_slice %115 {offsets = [0, 0], sizes = [8, 32], strides = [1, 1]} : vector<8x128xf32> to vector<8x32xf32>
    %118 = vector.extract_strided_slice %115 {offsets = [0, 32], sizes = [8, 32], strides = [1, 1]} : vector<8x128xf32> to vector<8x32xf32>
    %119 = vector.extract_strided_slice %116 {offsets = [0, 64], sizes = [8, 32], strides = [1, 1]} : vector<8x128xf32> to vector<8x32xf32>
    %120 = vector.extract_strided_slice %115 {offsets = [0, 96], sizes = [8, 32], strides = [1, 1]} : vector<8x128xf32> to vector<8x32xf32>
    %121 = arith.mulf %118, %103 : vector<8x32xf32>
    %122 = arith.mulf %117, %119 : vector<8x32xf32>
    %123 = arith.addf %121, %122 : vector<8x32xf32>
    %124 = math.tanh %123 : vector<8x32xf32>
    %125 = arith.mulf %120, %124 : vector<8x32xf32>
    %c0_29 = arith.constant 0 : index
    %c6 = arith.constant 6 : index
    %c0_30 = arith.constant 0 : index
    %126 = vector.load %arg0[%c0_29, %c6, %c0_30] : memref<8x8x16xf32, #tpu.memory_space<vmem>>, vector<8x1x16xf32>
    %127 = vector.shape_cast %126 : vector<8x1x16xf32> to vector<8x16xf32>
    %128 = tpu.concatenate %127, %125 in 1 : vector<8x16xf32>, vector<8x32xf32> -> vector<8x48xf32>
    %cst_31 = arith.constant dense<0.000000e+00> : vector<8x128xf32>
    %129 = tpu.matmul %128, %0, %cst_31 {dimension_numbers = #tpu.dot_dimension_numbers<[1], [0], [0], [1], [0, 0, 1, 1], [], []>} : vector<8x48xf32>, vector<48x128xf32>, vector<8x128xf32> -> vector<8x128xf32>
    %130 = arith.addf %129, %3 : vector<8x128xf32>
    %131 = arith.negf %130 : vector<8x128xf32>
    %132 = math.exp %131 : vector<8x128xf32>
    %cst_32 = arith.constant 1.000000e+00 : f32
    %133 = vector.broadcast %cst_32 : f32 to vector<8x128xf32>
    %134 = arith.addf %133, %132 : vector<8x128xf32>
    %135 = arith.divf %133, %134 : vector<8x128xf32>
    %136 = math.tanh %130 : vector<8x128xf32>
    %137 = vector.extract_strided_slice %135 {offsets = [0, 0], sizes = [8, 32], strides = [1, 1]} : vector<8x128xf32> to vector<8x32xf32>
    %138 = vector.extract_strided_slice %135 {offsets = [0, 32], sizes = [8, 32], strides = [1, 1]} : vector<8x128xf32> to vector<8x32xf32>
    %139 = vector.extract_strided_slice %136 {offsets = [0, 64], sizes = [8, 32], strides = [1, 1]} : vector<8x128xf32> to vector<8x32xf32>
    %140 = vector.extract_strided_slice %135 {offsets = [0, 96], sizes = [8, 32], strides = [1, 1]} : vector<8x128xf32> to vector<8x32xf32>
    %141 = arith.mulf %138, %123 : vector<8x32xf32>
    %142 = arith.mulf %137, %139 : vector<8x32xf32>
    %143 = arith.addf %141, %142 : vector<8x32xf32>
    %144 = math.tanh %143 : vector<8x32xf32>
    %145 = arith.mulf %140, %144 : vector<8x32xf32>
    %c0_33 = arith.constant 0 : index
    %c7 = arith.constant 7 : index
    %c0_34 = arith.constant 0 : index
    %146 = vector.load %arg0[%c0_33, %c7, %c0_34] : memref<8x8x16xf32, #tpu.memory_space<vmem>>, vector<8x1x16xf32>
    %147 = vector.shape_cast %146 : vector<8x1x16xf32> to vector<8x16xf32>
    %148 = tpu.concatenate %147, %145 in 1 : vector<8x16xf32>, vector<8x32xf32> -> vector<8x48xf32>
    %cst_35 = arith.constant dense<0.000000e+00> : vector<8x128xf32>
    %149 = tpu.matmul %148, %0, %cst_35 {dimension_numbers = #tpu.dot_dimension_numbers<[1], [0], [0], [1], [0, 0, 1, 1], [], []>} : vector<8x48xf32>, vector<48x128xf32>, vector<8x128xf32> -> vector<8x128xf32>
    %150 = arith.addf %149, %3 : vector<8x128xf32>
    %151 = arith.negf %150 : vector<8x128xf32>
    %152 = math.exp %151 : vector<8x128xf32>
    %cst_36 = arith.constant 1.000000e+00 : f32
    %153 = vector.broadcast %cst_36 : f32 to vector<8x128xf32>
    %154 = arith.addf %153, %152 : vector<8x128xf32>
    %155 = arith.divf %153, %154 : vector<8x128xf32>
    %156 = math.tanh %150 : vector<8x128xf32>
    %157 = vector.extract_strided_slice %155 {offsets = [0, 0], sizes = [8, 32], strides = [1, 1]} : vector<8x128xf32> to vector<8x32xf32>
    %158 = vector.extract_strided_slice %155 {offsets = [0, 32], sizes = [8, 32], strides = [1, 1]} : vector<8x128xf32> to vector<8x32xf32>
    %159 = vector.extract_strided_slice %156 {offsets = [0, 64], sizes = [8, 32], strides = [1, 1]} : vector<8x128xf32> to vector<8x32xf32>
    %160 = vector.extract_strided_slice %155 {offsets = [0, 96], sizes = [8, 32], strides = [1, 1]} : vector<8x128xf32> to vector<8x32xf32>
    %161 = arith.mulf %158, %143 : vector<8x32xf32>
    %162 = arith.mulf %157, %159 : vector<8x32xf32>
    %163 = arith.addf %161, %162 : vector<8x32xf32>
    %164 = math.tanh %163 : vector<8x32xf32>
    %165 = arith.mulf %160, %164 : vector<8x32xf32>
    %c0_37 = arith.constant 0 : index
    %c0_38 = arith.constant 0 : index
    %166 = vector.load %arg3[%c0_37, %c0_38] : memref<1x32xf32, #tpu.memory_space<vmem>>, vector<1x32xf32>
    %167 = vector.broadcast %166 : vector<1x32xf32> to vector<8x32xf32>
    %168 = arith.mulf %165, %167 : vector<8x32xf32>
    %cst_39 = arith.constant dense<0.000000e+00> : vector<8xf32>
    %169 = vector.multi_reduction <add>, %168, %cst_39 [1] : vector<8x32xf32> to vector<8xf32>
    %170 = vector.shape_cast %169 : vector<8xf32> to vector<8x1xf32>
    %c0_40 = arith.constant 0 : index
    %c0_41 = arith.constant 0 : index
    %171 = vector.load %arg4[%c0_40, %c0_41] : memref<1x1xf32, #tpu.memory_space<vmem>>, vector<1x1xf32>
    %172 = vector.broadcast %171 : vector<1x1xf32> to vector<8x1xf32>
    %173 = arith.addf %170, %172 : vector<8x1xf32>
    %c0_42 = arith.constant 0 : index
    %c0_43 = arith.constant 0 : index
    %174 = vector.load %arg5[%c0_42, %c0_43] : memref<8x1xf32, #tpu.memory_space<vmem>>, vector<8x1xf32>
    tpu.vector_store %arg5[%c0_42, %c0_43], %173 {strides = array<i32>} : memref<8x1xf32, #tpu.memory_space<vmem>>, vector<8x1xf32>,
    return
  }
}

</mosaic_0001>

<bundles_post_ra>
// kernel: tpu_custom_call.1
= control target key start
LH: loop header
LB: loop body
LE: loop exit
PB: predicated region body
PF: predicated region fallthrough
CT: control target
= control target key end

     0   :  { %s1218_s0 = inlined_call_operand.hbm [shape: f32[8,8,16], index: 0, kind: input, shape index: {}]   ;;  %s1219_s1 = inlined_call_operand.hbm [shape: f32[48,128], index: 1, kind: input, shape index: {}]   ;;  %s1220_s2 = inlined_call_operand.vmem [shape: f32[1,128], index: 2, kind: input, shape index: {}]   ;;  %s1221_s3 = inlined_call_operand.vmem [shape: f32[1,32], index: 3, kind: input, shape index: {}]   ;;  %s1222_s4 = inlined_call_operand.<no memory space> [shape: f32[1,1], index: 4, kind: input, shape index: {}]   ;;  %s1223_s5 = inlined_call_operand.vmem [shape: f32[8,1], index: 5, kind: output, shape index: {}]  }
   0x1   :  { %v10_v0 = vstv %s1222_s4 }
   0x2   :  { %11 = vst [vmem:[#allocation2] sm:$0x1] %v10_v0 }
   0x3   :  { %12 = vsyncpa [#allocation4], 0  ;;  %s18_s22 = sshll.u32 %s1218_s0, 4  ;;  %s19_s22 = int_to_ptr.hbm [resolvable:$true] %s18_s22 }
   0x4   :  { %13 = vsyncpa [#allocation6], 0  ;;  %s1008_s23 = smov [#allocation3]   ;;  %s31_s27 = sshll.u32 %s1219_s1, 4  ;;  %s32_s27 = int_to_ptr.hbm [resolvable:$true] %s31_s27 }
   0x5   :  { %s20_s24 = sshll.u32 %s1008_s23, 4  ;;  %s1009_s28 = smov 128   ;;  %s21_s24 = int_to_ptr.vmem [resolvable:$true] %s20_s24 }
   0x6   :  { %s1010_s29 = smov 8   ;;  %s1011_s4 = smov [#allocation5]  }
   0x7   :  { %26 = dma.hbm_to_vmem [thread:$0]  %s19_s22, 1024, %s21_s24, [#allocation4], %s1009_s28, %s1009_s28, %s1010_s29  }
   0x8   :  { %s33_s30 = sshll.u32 %s1011_s4, 4  ;;  %s34_s30 = int_to_ptr.vmem [resolvable:$true] %s33_s30 }
   0x9   :  { %39 = dma.hbm_to_vmem [thread:$0]  %s32_s27, 768, %s34_s30, [#allocation6], %s1009_s28, %s1009_s28, %s1010_s29  }
   0xa   :  { %1004 = dma.done.wait [#allocation4], 1024  }
   0xb   :  { %1005 = vsyncadd [#allocation4], 4294966272 }
   0xc   :  { %1006 = dma.done.wait [#allocation6], 768  }
   0xd   :  { %1007 = vsyncadd [#allocation6], 4294966528  ;;  %v1055_v1 = vld [vmem:[#allocation5 + $0x28] sm:$0xff]  ;;  %v1057_v2 = vld [vmem:[#allocation5 + $0x20] sm:$0xff]  ;;  %vm81_vm0 = vcmask 1041409   ;;  %vm84_vm1 = vcmask 1042434  }
   0xe   :  { %118 = vmatpush.msra.mxu0 %v1055_v1  ;;  %v1060_v3 = vld [vmem:[#allocation5 + $0x18] sm:$0xff]  ;;  %214 = vmatpush.msra.mxu1 %v1055_v1  ;;  %v64_v4 = vld [vmem:[#allocation3] sm:$0x1]  ;;  %v65_v5 = vld [vmem:[#allocation3 + $0x8] sm:$0x1]  ;;  %vm87_vm2 = vcmask 1043459  }
   0xf   :  { %v66_v6 = vld [vmem:[#allocation3 + $0x10] sm:$0x1]  ;;  %310 = vmatpush.msra.mxu2 %v1055_v1  ;;  %406 = vmatpush.msra.mxu3 %v1055_v1  ;;  %v67_v7 = vld [vmem:[#allocation3 + $0x18] sm:$0x1]  ;;  %v68_v8 = vld [vmem:[#allocation3 + $0x20] sm:$0x1] }
  0x10   :  { %119 = vmatpush.msra.mxu0 %v1057_v2  ;;  %v69_v9 = vld [vmem:[#allocation3 + $0x28] sm:$0x1]  ;;  %215 = vmatpush.msra.mxu1 %v1057_v2  ;;  %v1067_v10 = vld [vmem:[#allocation5 + $0x10] sm:$0xff]  ;;  %v80_v12 = vrot.slane %v65_v5, 7  ;;  %v83_v13 = vrot.slane %v66_v6, 6  ;;  %v86_v15 = vrot.slane %v67_v7, 5 }
  0x11   :  { %v70_v11 = vld [vmem:[#allocation3 + $0x30] sm:$0x1]  ;;  %311 = vmatpush.msra.mxu2 %v1057_v2  ;;  %407 = vmatpush.msra.mxu3 %v1057_v2  ;;  %v71_v14 = vld [vmem:[#allocation3 + $0x38] sm:$0x1]  ;;  %v89_v16 = vrot.slane %v68_v8, 4  ;;  %v55_v17 = vld [vmem:[#allocation5 + $0x8] sm:$0xff] }
  0x12   :  { %120 = vmatpush.msra.mxu0 %v1060_v3  ;;  %216 = vmatpush.msra.mxu1 %v1060_v3  ;;  %v82_v18 = vsel %vm81_vm0, %v80_v12, %v64_v4  ;;  %vm90_vm3 = vcmask 1044484   ;;  %v92_v19 = vrot.slane %v69_v9, 3  ;;  %vm93_vm4 = vcmask 1045509   ;;  %v54_v22 = vld [vmem:[#allocation5] sm:$0xff]  ;;  %v1107_v30 = vld [vmem:[%s1220_s2] ss:$0 sm:$0xff] }
  0x13   :  { %312 = vmatpush.msra.mxu2 %v1060_v3  ;;  %408 = vmatpush.msra.mxu3 %v1060_v3  ;;  %v85_v20 = vsel %vm84_vm1, %v83_v13, %v82_v18  ;;  %v95_v21 = vrot.slane %v70_v11, 2  ;;  %vm96_vm5 = vcmask 1046534   ;;  %v98_v24 = vrot.slane %v71_v14, 1  ;;  %s1012_s6 = smov 64   ;;  %s1013_s2 = smov 32  }
  0x14   :  { %121 = vmatpush.msra.mxu0 %v1067_v10  ;;  %217 = vmatpush.msra.mxu1 %v1067_v10  ;;  %v88_v23 = vsel %vm87_vm2, %v86_v15, %v85_v20  ;;  %vm99_vm6 = vcmask 1047559   ;;  %vm102_vm7 = vcmask 130048   ;;  %vm104_vm8 = vcmask 392192   ;;  %s1014_s7 = smov 48   ;;  %v166_v55 = vld [vmem:[#allocation3 + $0x9] sm:$0x1] }
  0x15   :  { %313 = vmatpush.msra.mxu2 %v1067_v10  ;;  %409 = vmatpush.msra.mxu3 %v1067_v10  ;;  %v91_v25 = vsel %vm90_vm3, %v89_v16, %v88_v23  ;;  %v167_v56 = vld [vmem:[#allocation3 + $0x11] sm:$0x1]  ;;  %v181_v57 = vrot.slane %v166_v55, 7  ;;  %v165_v58 = vld [vmem:[#allocation3 + $0x1] sm:$0x1]  ;;  %s1015_s10 = smov 96  }
  0x16   :  { %122 = vmatpush.msra.mxu0 %v55_v17  ;;  %218 = vmatpush.msra.mxu1 %v55_v17  ;;  %v94_v26 = vsel %vm93_vm4, %v92_v19, %v91_v25  ;;  %v168_v59 = vld [vmem:[#allocation3 + $0x19] sm:$0x1]  ;;  %v183_v60 = vrot.slane %v167_v56, 6  ;;  %v169_v62 = vld [vmem:[#allocation3 + $0x21] sm:$0x1] }
  0x17   :  { %314 = vmatpush.msra.mxu2 %v55_v17  ;;  %410 = vmatpush.msra.mxu3 %v55_v17  ;;  %v97_v27 = vsel %vm96_vm5, %v95_v21, %v94_v26  ;;  %v182_v61 = vsel %vm81_vm0, %v181_v57, %v165_v58  ;;  %v185_v63 = vrot.slane %v168_v59, 5  ;;  %v171_v4 = vld [vmem:[#allocation3 + $0x31] sm:$0x1]  ;;  %v172_v7 = vld [vmem:[#allocation3 + $0x39] sm:$0x1] }
  0x18   :  { %123 = vmatpush.msra.mxu0 %v54_v22  ;;  %219 = vmatpush.msra.mxu1 %v54_v22  ;;  %v100_v28 = vsel %vm99_vm6, %v98_v24, %v97_v27  ;;  %v184_v0 = vsel %vm84_vm1, %v183_v60, %v182_v61  ;;  %v191_v8 = vrot.slane %v171_v4, 2  ;;  %v268_v56 = vld [vmem:[#allocation3 + $0x3a] sm:$0x1] }
  0x19   :  { %315 = vmatpush.msra.mxu2 %v54_v22  ;;  %411 = vmatpush.msra.mxu3 %v54_v22  ;;  %v103_v29 = vsel %vm102_vm7, %v100_v28, 0.0  ;;  %v289_v59 = vrot.slane %v268_v56, 1 }
  0x1a   :  { %502 = vmatpush.msrb.mxu0 %v1055_v1  ;;  %598 = vmatpush.msrb.mxu1 %v1055_v1 }
  0x1b   :  { %865 = vmatmul.msk.f32.vlgmr.msra.gmra.mxu0 %vm104_vm8, %v103_v29  ;;  %694 = vmatpush.msrb.mxu2 %v1055_v1 }
  0x1c   :  { %503 = vmatpush.msrb.mxu0 %v1057_v2  ;;  %599 = vmatpush.msrb.mxu1 %v1057_v2 }
  0x1d   :  { %695 = vmatpush.msrb.mxu2 %v1057_v2  ;;  %790 = vmatpush.msrb.mxu3 %v1055_v1  ;;  %v170_v1 = vld [vmem:[#allocation3 + $0x29] sm:$0x1] }
  0x1e   :  { %504 = vmatpush.msrb.mxu0 %v1060_v3  ;;  %600 = vmatpush.msrb.mxu1 %v1060_v3  ;;  %v189_v5 = vrot.slane %v170_v1, 3 }
  0x1f   :  { %696 = vmatpush.msrb.mxu2 %v1060_v3  ;;  %791 = vmatpush.msrb.mxu3 %v1057_v2  ;;  %v187_v2 = vrot.slane %v169_v62, 4 }
  0x20   :  { %505 = vmatpush.msrb.mxu0 %v1067_v10  ;;  %601 = vmatpush.msrb.mxu1 %v1067_v10 }
  0x21   :  { %697 = vmatpush.msrb.mxu2 %v1067_v10  ;;  %792 = vmatpush.msrb.mxu3 %v1060_v3  ;;  %v186_v3 = vsel %vm87_vm2, %v185_v63, %v184_v0 }
  0x22   :  { %506 = vmatpush.msrb.mxu0 %v55_v17  ;;  %602 = vmatpush.msrb.mxu1 %v55_v17  ;;  %v188_v6 = vsel %vm90_vm3, %v187_v2, %v186_v3 }
  0x23   :  { %698 = vmatpush.msrb.mxu2 %v55_v17  ;;  %793 = vmatpush.msrb.mxu3 %v1067_v10  ;;  %v190_v9 = vsel %vm93_vm4, %v189_v5, %v188_v6  ;;  %v193_v10 = vrot.slane %v172_v7, 1 }
  0x24   :  { %507 = vmatpush.msrb.mxu0 %v54_v22  ;;  %603 = vmatpush.msrb.mxu1 %v54_v22  ;;  %v192_v11 = vsel %vm96_vm5, %v191_v8, %v190_v9 }
  0x25   :  { %699 = vmatpush.msrb.mxu2 %v54_v22  ;;  %794 = vmatpush.msrb.mxu3 %v55_v17  ;;  %v194_v12 = vsel %vm99_vm6, %v193_v10, %v192_v11 }
  0x27   :  { %795 = vmatpush.msrb.mxu3 %v54_v22 }
  0x98   :  { %v125_v31 = vpop.f32.mrf.mxu0 }
  0x99   :  { %v126_v32 = vadd.f32 %v1107_v30, %v125_v31 }
  0x9b   :  { %892 = vtanh.f32 %v126_v32  ;;  %v866_v34 = vmul.f32 -1.442695, %v126_v32 }
  0x9d   :  { %894 = vpow2.f32 %v866_v34 }
  0xa1   :  { %v893_v33 = vpop.eup %892 }
  0xa2   :  { %150 = vrot.lane.b32.xlu0 %v893_v33, %s1012_s6 }
  0xa3   :  { %v895_v35 = vpop.eup %894 }
  0xa4   :  { %v131_v36 = vadd.f32 1.0, %v895_v35 }
  0xa6   :  { %896 = vrcp.f32 %v131_v36  ;;  %v143_v42 = vand.u32 2147483648, %v131_v36  ;;  %vm137_vm10 = vweird.f32 %v131_v36  ;;  %v141_v43 = vand.u32 2147483647, %v131_v36 }
  0xa8   :  { %v144_v45 = vor.u32 1.1754944e-38, %v143_v42  ;;  %vm142_vm12 = vcmp.eq.f32.partialorder %v141_v43, 8.507059e+37  ;;  %v261_v43 = vld [vmem:[#allocation3 + $0x2] sm:$0x1] }
  0xac   :  { %v897_v37 = vpop.eup %896 }
  0xad   :  { %v133_v38 = vmul.f32 %v897_v37, %v131_v36  ;;  %vm138_vm9 = vweird.f32 %v897_v37 }
  0xae   :  { %vm139_vm11 = vmor %vm137_vm10, %vm138_vm9 }
  0xaf   :  { %v134_v39 = vsub.f32 1.0, %v133_v38 }
  0xb1   :  { %v135_v40 = vmul.f32 %v897_v37, %v134_v39 }
  0xb3   :  { %v136_v41 = vadd.f32 %v897_v37, %v135_v40  ;;  %v262_v40 = vld [vmem:[#allocation3 + $0xa] sm:$0x1] }
  0xb4   :  { %v277_v42 = vrot.slane %v262_v40, 7 }
  0xb5   :  { %v140_v44 = vsel %vm139_vm11, %v897_v37, %v136_v41  ;;  %v263_v41 = vld [vmem:[#allocation3 + $0x12] sm:$0x1] }
  0xb6   :  { %v145_v47 = vsel %vm142_vm12, %v144_v45, %v140_v44  ;;  %v264_v44 = vld [vmem:[#allocation3 + $0x1a] sm:$0x1]  ;;  %v279_v45 = vrot.slane %v263_v41, 6  ;;  %v364_v41 = vld [vmem:[#allocation3 + $0x3b] sm:$0x1] }
  0xb7   :  { %v148_v49 = vmul.f32 0.0, %v145_v47 }
 0x114   :  { %v151_v46 = vpop.permute.xlu0 %150 }
 0x115   :  { %v153_v48 = vmul.f32 %v151_v46, %v145_v47  ;;  %v278_v46 = vsel %vm81_vm0, %v277_v42, %v261_v43 }
 0x117   :  { %155 = vrot.lane.b32.xlu0 %v153_v48, %s1013_s2  ;;  %v281_v48 = vrot.slane %v264_v44, 5  ;;  %v385_v44 = vrot.slane %v364_v41, 1 }
 0x189   :  { %v156_v50 = vpop.permute.xlu0 %155 }
 0x18a   :  { %v158_v51 = vadd.f32 %v156_v50, %v148_v49  ;;  %v280_v49 = vsel %vm84_vm1, %v279_v45, %v278_v46  ;;  %v266_v50 = vld [vmem:[#allocation3 + $0x2a] sm:$0x1] }
 0x18c   :  { %898 = vtanh.f32 %v158_v51 }
 0x192   :  { %v899_v52 = vpop.eup %898 }
 0x193   :  { %161 = vrot.lane.b32.xlu1 %v899_v52, %s1012_s6  ;;  %v282_v52 = vsel %vm87_vm2, %v281_v48, %v280_v49 }
 0x205   :  { %v162_v53 = vpop.permute.xlu1 %161 }
 0x206   :  { %v164_v54 = vmul.f32 %v162_v53, %v145_v47  ;;  %v265_v47 = vld [vmem:[#allocation3 + $0x22] sm:$0x1]  ;;  %v267_v53 = vld [vmem:[#allocation3 + $0x32] sm:$0x1] }
 0x207   :  { %v287_v57 = vrot.slane %v267_v53, 2 }
 0x208   :  { %197 = vrot.lane.b32.xlu1 %v164_v54, %s1014_s7  ;;  %v285_v54 = vrot.slane %v266_v50, 3 }
 0x27a   :  { %v198_v13 = vpop.permute.xlu1 %197 }
 0x27b   :  { %v200_v14 = vsel %vm102_vm7, %v194_v12, %v198_v13 }
 0x27c   :  { %867 = vmatmul.msk.f32.vlgmr.msra.gmra.mxu1 %vm104_vm8, %v200_v14 }
 0x2f9   :  { %v221_v15 = vpop.f32.mrf.mxu1 }
 0x2fa   :  { %v222_v16 = vadd.f32 %v1107_v30, %v221_v15 }
 0x2fc   :  { %900 = vtanh.f32 %v222_v16  ;;  %v868_v18 = vmul.f32 -1.442695, %v222_v16 }
 0x2fe   :  { %902 = vpow2.f32 %v868_v18 }
 0x302   :  { %v901_v17 = vpop.eup %900 }
 0x303   :  { %246 = vrot.lane.b32.xlu2 %v901_v17, %s1012_s6 }
 0x304   :  { %v903_v19 = vpop.eup %902 }
 0x305   :  { %v227_v20 = vadd.f32 1.0, %v903_v19 }
 0x307   :  { %904 = vrcp.f32 %v227_v20  ;;  %v239_v26 = vand.u32 2147483648, %v227_v20  ;;  %vm233_vm14 = vweird.f32 %v227_v20  ;;  %v237_v27 = vand.u32 2147483647, %v227_v20 }
 0x309   :  { %v240_v29 = vor.u32 1.1754944e-38, %v239_v26  ;;  %vm238_vm9 = vcmp.eq.f32.partialorder %v237_v27, 8.507059e+37  ;;  %v357_v27 = vld [vmem:[#allocation3 + $0x3] sm:$0x1] }
 0x30d   :  { %v905_v21 = vpop.eup %904 }
 0x30e   :  { %v229_v22 = vmul.f32 %v905_v21, %v227_v20  ;;  %vm234_vm13 = vweird.f32 %v905_v21 }
 0x30f   :  { %vm235_vm15 = vmor %vm233_vm14, %vm234_vm13 }
 0x310   :  { %v230_v23 = vsub.f32 1.0, %v229_v22 }
 0x312   :  { %v231_v24 = vmul.f32 %v905_v21, %v230_v23 }
 0x314   :  { %v232_v25 = vadd.f32 %v905_v21, %v231_v24  ;;  %v358_v24 = vld [vmem:[#allocation3 + $0xb] sm:$0x1] }
 0x315   :  { %v373_v26 = vrot.slane %v358_v24, 7 }
 0x316   :  { %v236_v28 = vsel %vm235_vm15, %v905_v21, %v232_v25  ;;  %v359_v25 = vld [vmem:[#allocation3 + $0x13] sm:$0x1] }
 0x317   :  { %v241_v32 = vsel %vm238_vm9, %v240_v29, %v236_v28  ;;  %v360_v28 = vld [vmem:[#allocation3 + $0x1b] sm:$0x1]  ;;  %v375_v29 = vrot.slane %v359_v25, 6  ;;  %v460_v25 = vld [vmem:[#allocation3 + $0x3c] sm:$0x1] }
 0x318   :  { %v244_v34 = vmul.f32 %v241_v32, %v158_v51  ;;  %v283_v51 = vrot.slane %v265_v47, 4 }
 0x31a   :  { %v284_v55 = vsel %vm90_vm3, %v283_v51, %v282_v52 }
 0x31b   :  { %v286_v58 = vsel %vm93_vm4, %v285_v54, %v284_v55 }
 0x31c   :  { %v288_v60 = vsel %vm96_vm5, %v287_v57, %v286_v58 }
 0x31d   :  { %v290_v61 = vsel %vm99_vm6, %v289_v59, %v288_v60 }
 0x35d   :  { %v247_v31 = vpop.permute.xlu2 %246 }
 0x35e   :  { %v249_v33 = vmul.f32 %v247_v31, %v241_v32  ;;  %v374_v31 = vsel %vm81_vm0, %v373_v26, %v357_v27 }
 0x360   :  { %251 = vrot.lane.b32.xlu2 %v249_v33, %s1013_s2  ;;  %v377_v33 = vrot.slane %v360_v28, 5  ;;  %v481_v28 = vrot.slane %v460_v25, 1 }
 0x3ba   :  { %v252_v35 = vpop.permute.xlu2 %251 }
 0x3bb   :  { %v254_v36 = vadd.f32 %v252_v35, %v244_v34  ;;  %v376_v34 = vsel %vm84_vm1, %v375_v29, %v374_v31  ;;  %v362_v35 = vld [vmem:[#allocation3 + $0x2b] sm:$0x1] }
 0x3bd   :  { %906 = vtanh.f32 %v254_v36 }
 0x3c3   :  { %v907_v37 = vpop.eup %906 }
 0x3c4   :  { %257 = vrot.lane.b32.xlu0 %v907_v37, %s1012_s6  ;;  %v378_v37 = vsel %vm87_vm2, %v377_v33, %v376_v34 }
 0x436   :  { %v258_v38 = vpop.permute.xlu0 %257 }
 0x437   :  { %v260_v39 = vmul.f32 %v258_v38, %v241_v32  ;;  %v361_v32 = vld [vmem:[#allocation3 + $0x23] sm:$0x1]  ;;  %v363_v38 = vld [vmem:[#allocation3 + $0x33] sm:$0x1] }
 0x438   :  { %v383_v42 = vrot.slane %v363_v38, 2 }
 0x439   :  { %293 = vrot.lane.b32.xlu1 %v260_v39, %s1014_s7  ;;  %v381_v39 = vrot.slane %v362_v35, 3 }
 0x4ab   :  { %v294_v62 = vpop.permute.xlu1 %293 }
 0x4ac   :  { %v296_v63 = vsel %vm102_vm7, %v290_v61, %v294_v62 }
 0x4ad   :  { %869 = vmatmul.msk.f32.vlgmr.msra.gmra.mxu2 %vm104_vm8, %v296_v63 }
 0x530   :  { %v317_v0 = vpop.f32.mrf.mxu2 }
 0x531   :  { %v318_v1 = vadd.f32 %v1107_v30, %v317_v0 }
 0x533   :  { %908 = vtanh.f32 %v318_v1  ;;  %v870_v3 = vmul.f32 -1.442695, %v318_v1 }
 0x535   :  { %910 = vpow2.f32 %v870_v3 }
 0x539   :  { %v909_v2 = vpop.eup %908 }
 0x53a   :  { %342 = vrot.lane.b32.xlu2 %v909_v2, %s1012_s6 }
 0x53b   :  { %v911_v4 = vpop.eup %910 }
 0x53c   :  { %v323_v5 = vadd.f32 1.0, %v911_v4 }
 0x53e   :  { %912 = vrcp.f32 %v323_v5  ;;  %v335_v11 = vand.u32 2147483648, %v323_v5  ;;  %vm329_vm11 = vweird.f32 %v323_v5  ;;  %v333_v12 = vand.u32 2147483647, %v323_v5 }
 0x540   :  { %v336_v14 = vor.u32 1.1754944e-38, %v335_v11  ;;  %vm334_vm13 = vcmp.eq.f32.partialorder %v333_v12, 8.507059e+37  ;;  %v453_v12 = vld [vmem:[#allocation3 + $0x4] sm:$0x1] }
 0x544   :  { %v913_v6 = vpop.eup %912 }
 0x545   :  { %v325_v7 = vmul.f32 %v913_v6, %v323_v5  ;;  %vm330_vm10 = vweird.f32 %v913_v6 }
 0x546   :  { %vm331_vm12 = vmor %vm329_vm11, %vm330_vm10 }
 0x547   :  { %v326_v8 = vsub.f32 1.0, %v325_v7 }
 0x549   :  { %v327_v9 = vmul.f32 %v913_v6, %v326_v8 }
 0x54b   :  { %v328_v10 = vadd.f32 %v913_v6, %v327_v9  ;;  %v454_v9 = vld [vmem:[#allocation3 + $0xc] sm:$0x1] }
 0x54c   :  { %v469_v11 = vrot.slane %v454_v9, 7 }
 0x54d   :  { %v332_v13 = vsel %vm331_vm12, %v913_v6, %v328_v10  ;;  %v455_v10 = vld [vmem:[#allocation3 + $0x14] sm:$0x1] }
 0x54e   :  { %v337_v16 = vsel %vm334_vm13, %v336_v14, %v332_v13  ;;  %v456_v13 = vld [vmem:[#allocation3 + $0x1c] sm:$0x1]  ;;  %v471_v14 = vrot.slane %v455_v10, 6  ;;  %v556_v10 = vld [vmem:[#allocation3 + $0x3d] sm:$0x1] }
 0x54f   :  { %v340_v18 = vmul.f32 %v337_v16, %v254_v36  ;;  %v379_v36 = vrot.slane %v361_v32, 4 }
 0x551   :  { %v380_v40 = vsel %vm90_vm3, %v379_v36, %v378_v37 }
 0x552   :  { %v382_v43 = vsel %vm93_vm4, %v381_v39, %v380_v40 }
 0x553   :  { %v384_v45 = vsel %vm96_vm5, %v383_v42, %v382_v43 }
 0x554   :  { %v386_v46 = vsel %vm99_vm6, %v385_v44, %v384_v45 }
 0x594   :  { %v343_v15 = vpop.permute.xlu2 %342 }
 0x595   :  { %v345_v17 = vmul.f32 %v343_v15, %v337_v16  ;;  %v470_v15 = vsel %vm81_vm0, %v469_v11, %v453_v12 }
 0x597   :  { %347 = vrot.lane.b32.xlu0 %v345_v17, %s1013_s2  ;;  %v473_v17 = vrot.slane %v456_v13, 5  ;;  %v577_v13 = vrot.slane %v556_v10, 1 }
 0x609   :  { %v348_v19 = vpop.permute.xlu0 %347 }
 0x60a   :  { %v350_v20 = vadd.f32 %v348_v19, %v340_v18  ;;  %v472_v18 = vsel %vm84_vm1, %v471_v14, %v470_v15  ;;  %v458_v19 = vld [vmem:[#allocation3 + $0x2c] sm:$0x1] }
 0x60c   :  { %914 = vtanh.f32 %v350_v20 }
 0x612   :  { %v915_v21 = vpop.eup %914 }
 0x613   :  { %353 = vrot.lane.b32.xlu1 %v915_v21, %s1012_s6  ;;  %v474_v21 = vsel %vm87_vm2, %v473_v17, %v472_v18 }
 0x685   :  { %v354_v22 = vpop.permute.xlu1 %353 }
 0x686   :  { %v356_v23 = vmul.f32 %v354_v22, %v337_v16  ;;  %v457_v16 = vld [vmem:[#allocation3 + $0x24] sm:$0x1]  ;;  %v459_v22 = vld [vmem:[#allocation3 + $0x34] sm:$0x1] }
 0x687   :  { %v479_v26 = vrot.slane %v459_v22, 2 }
 0x688   :  { %389 = vrot.lane.b32.xlu2 %v356_v23, %s1014_s7  ;;  %v477_v23 = vrot.slane %v458_v19, 3 }
 0x6e2   :  { %v390_v47 = vpop.permute.xlu2 %389 }
 0x6e3   :  { %v392_v48 = vsel %vm102_vm7, %v386_v46, %v390_v47 }
 0x6e4   :  { %871 = vmatmul.msk.f32.vlgmr.msra.gmra.mxu3 %vm104_vm8, %v392_v48 }
 0x767   :  { %v413_v49 = vpop.f32.mrf.mxu3 }
 0x768   :  { %v414_v50 = vadd.f32 %v1107_v30, %v413_v49 }
 0x76a   :  { %916 = vtanh.f32 %v414_v50  ;;  %v872_v52 = vmul.f32 -1.442695, %v414_v50 }
 0x76c   :  { %918 = vpow2.f32 %v872_v52 }
 0x770   :  { %v917_v51 = vpop.eup %916 }
 0x771   :  { %438 = vrot.lane.b32.xlu0 %v917_v51, %s1012_s6 }
 0x772   :  { %v919_v53 = vpop.eup %918 }
 0x773   :  { %v419_v54 = vadd.f32 1.0, %v919_v53 }
 0x775   :  { %920 = vrcp.f32 %v419_v54  ;;  %v431_v60 = vand.u32 2147483648, %v419_v54  ;;  %vm425_vm15 = vweird.f32 %v419_v54  ;;  %v429_v61 = vand.u32 2147483647, %v419_v54 }
 0x777   :  { %v432_v63 = vor.u32 1.1754944e-38, %v431_v60  ;;  %vm430_vm10 = vcmp.eq.f32.partialorder %v429_v61, 8.507059e+37  ;;  %v549_v61 = vld [vmem:[#allocation3 + $0x5] sm:$0x1] }
 0x77b   :  { %v921_v55 = vpop.eup %920 }
 0x77c   :  { %v421_v56 = vmul.f32 %v921_v55, %v419_v54  ;;  %vm426_vm14 = vweird.f32 %v921_v55 }
 0x77d   :  { %vm427_vm9 = vmor %vm425_vm15, %vm426_vm14 }
 0x77e   :  { %v422_v57 = vsub.f32 1.0, %v421_v56 }
 0x780   :  { %v423_v58 = vmul.f32 %v921_v55, %v422_v57 }
 0x782   :  { %v424_v59 = vadd.f32 %v921_v55, %v423_v58  ;;  %v550_v58 = vld [vmem:[#allocation3 + $0xd] sm:$0x1] }
 0x783   :  { %v565_v60 = vrot.slane %v550_v58, 7 }
 0x784   :  { %v428_v62 = vsel %vm427_vm9, %v921_v55, %v424_v59  ;;  %v551_v59 = vld [vmem:[#allocation3 + $0x15] sm:$0x1] }
 0x785   :  { %v433_v1 = vsel %vm430_vm10, %v432_v63, %v428_v62  ;;  %v552_v62 = vld [vmem:[#allocation3 + $0x1d] sm:$0x1]  ;;  %v567_v63 = vrot.slane %v551_v59, 6  ;;  %v652_v59 = vld [vmem:[#allocation3 + $0x3e] sm:$0x1] }
 0x786   :  { %v436_v3 = vmul.f32 %v433_v1, %v350_v20  ;;  %v475_v20 = vrot.slane %v457_v16, 4 }
 0x788   :  { %v476_v24 = vsel %vm90_vm3, %v475_v20, %v474_v21 }
 0x789   :  { %v478_v27 = vsel %vm93_vm4, %v477_v23, %v476_v24 }
 0x78a   :  { %v480_v29 = vsel %vm96_vm5, %v479_v26, %v478_v27 }
 0x78b   :  { %v482_v31 = vsel %vm99_vm6, %v481_v28, %v480_v29 }
 0x7e3   :  { %v439_v0 = vpop.permute.xlu0 %438 }
 0x7e4   :  { %v441_v2 = vmul.f32 %v439_v0, %v433_v1  ;;  %v566_v0 = vsel %vm81_vm0, %v565_v60, %v549_v61 }
 0x7e6   :  { %443 = vrot.lane.b32.xlu1 %v441_v2, %s1013_s2  ;;  %v569_v2 = vrot.slane %v552_v62, 5  ;;  %v673_v62 = vrot.slane %v652_v59, 1 }
 0x858   :  { %v444_v4 = vpop.permute.xlu1 %443 }
 0x859   :  { %v446_v5 = vadd.f32 %v444_v4, %v436_v3  ;;  %v568_v3 = vsel %vm84_vm1, %v567_v63, %v566_v0  ;;  %v554_v4 = vld [vmem:[#allocation3 + $0x2d] sm:$0x1] }
 0x85b   :  { %922 = vtanh.f32 %v446_v5 }
 0x861   :  { %v923_v6 = vpop.eup %922 }
 0x862   :  { %449 = vrot.lane.b32.xlu2 %v923_v6, %s1012_s6  ;;  %v570_v6 = vsel %vm87_vm2, %v569_v2, %v568_v3 }
 0x8bc   :  { %v450_v7 = vpop.permute.xlu2 %449 }
 0x8bd   :  { %v452_v8 = vmul.f32 %v450_v7, %v433_v1  ;;  %v553_v1 = vld [vmem:[#allocation3 + $0x25] sm:$0x1]  ;;  %v555_v7 = vld [vmem:[#allocation3 + $0x35] sm:$0x1] }
 0x8be   :  { %v575_v11 = vrot.slane %v555_v7, 2 }
 0x8bf   :  { %485 = vrot.lane.b32.xlu0 %v452_v8, %s1014_s7  ;;  %v573_v8 = vrot.slane %v554_v4, 3 }
 0x931   :  { %v486_v32 = vpop.permute.xlu0 %485 }
 0x932   :  { %v488_v33 = vsel %vm102_vm7, %v482_v31, %v486_v32 }
 0x933   :  { %873 = vmatmul.msk.f32.vlgmr.msrb.gmra.mxu0 %vm104_vm8, %v488_v33 }
 0x9b0   :  { %v509_v34 = vpop.f32.mrf.mxu0 }
 0x9b1   :  { %v510_v35 = vadd.f32 %v1107_v30, %v509_v34 }
 0x9b3   :  { %924 = vtanh.f32 %v510_v35  ;;  %v874_v37 = vmul.f32 -1.442695, %v510_v35 }
 0x9b5   :  { %926 = vpow2.f32 %v874_v37 }
 0x9b9   :  { %v925_v36 = vpop.eup %924 }
 0x9ba   :  { %534 = vrot.lane.b32.xlu1 %v925_v36, %s1012_s6 }
 0x9bb   :  { %v927_v38 = vpop.eup %926 }
 0x9bc   :  { %v515_v39 = vadd.f32 1.0, %v927_v38 }
 0x9be   :  { %928 = vrcp.f32 %v515_v39  ;;  %v527_v45 = vand.u32 2147483648, %v515_v39  ;;  %vm521_vm12 = vweird.f32 %v515_v39  ;;  %v525_v46 = vand.u32 2147483647, %v515_v39 }
 0x9c0   :  { %v528_v48 = vor.u32 1.1754944e-38, %v527_v45  ;;  %vm526_vm14 = vcmp.eq.f32.partialorder %v525_v46, 8.507059e+37  ;;  %v645_v46 = vld [vmem:[#allocation3 + $0x6] sm:$0x1] }
 0x9c4   :  { %v929_v40 = vpop.eup %928 }
 0x9c5   :  { %v517_v41 = vmul.f32 %v929_v40, %v515_v39  ;;  %vm522_vm11 = vweird.f32 %v929_v40 }
 0x9c6   :  { %vm523_vm13 = vmor %vm521_vm12, %vm522_vm11 }
 0x9c7   :  { %v518_v42 = vsub.f32 1.0, %v517_v41 }
 0x9c9   :  { %v519_v43 = vmul.f32 %v929_v40, %v518_v42 }
 0x9cb   :  { %v520_v44 = vadd.f32 %v929_v40, %v519_v43  ;;  %v646_v43 = vld [vmem:[#allocation3 + $0xe] sm:$0x1] }
 0x9cc   :  { %v661_v45 = vrot.slane %v646_v43, 7 }
 0x9cd   :  { %v524_v47 = vsel %vm523_vm13, %v929_v40, %v520_v44  ;;  %v647_v44 = vld [vmem:[#allocation3 + $0x16] sm:$0x1] }
 0x9ce   :  { %v529_v50 = vsel %vm526_vm14, %v528_v48, %v524_v47  ;;  %v648_v47 = vld [vmem:[#allocation3 + $0x1e] sm:$0x1]  ;;  %v663_v48 = vrot.slane %v647_v44, 6  ;;  %v748_v44 = vld [vmem:[#allocation3 + $0x3f] sm:$0x1] }
 0x9cf   :  { %v532_v52 = vmul.f32 %v529_v50, %v446_v5  ;;  %v571_v5 = vrot.slane %v553_v1, 4 }
 0x9d1   :  { %v572_v9 = vsel %vm90_vm3, %v571_v5, %v570_v6 }
 0x9d2   :  { %v574_v12 = vsel %vm93_vm4, %v573_v8, %v572_v9 }
 0x9d3   :  { %v576_v14 = vsel %vm96_vm5, %v575_v11, %v574_v12 }
 0x9d4   :  { %v578_v15 = vsel %vm99_vm6, %v577_v13, %v576_v14 }
 0xa2c   :  { %v535_v49 = vpop.permute.xlu1 %534 }
 0xa2d   :  { %v537_v51 = vmul.f32 %v535_v49, %v529_v50  ;;  %v662_v49 = vsel %vm81_vm0, %v661_v45, %v645_v46 }
 0xa2f   :  { %539 = vrot.lane.b32.xlu2 %v537_v51, %s1013_s2  ;;  %v665_v51 = vrot.slane %v648_v47, 5  ;;  %v769_v47 = vrot.slane %v748_v44, 1 }
 0xa89   :  { %v540_v53 = vpop.permute.xlu2 %539 }
 0xa8a   :  { %v542_v54 = vadd.f32 %v540_v53, %v532_v52  ;;  %v664_v52 = vsel %vm84_vm1, %v663_v48, %v662_v49  ;;  %v650_v53 = vld [vmem:[#allocation3 + $0x2e] sm:$0x1] }
 0xa8c   :  { %930 = vtanh.f32 %v542_v54 }
 0xa92   :  { %v931_v55 = vpop.eup %930 }
 0xa93   :  { %545 = vrot.lane.b32.xlu0 %v931_v55, %s1012_s6  ;;  %v666_v55 = vsel %vm87_vm2, %v665_v51, %v664_v52 }
 0xb05   :  { %v546_v56 = vpop.permute.xlu0 %545 }
 0xb06   :  { %v548_v57 = vmul.f32 %v546_v56, %v529_v50  ;;  %v649_v50 = vld [vmem:[#allocation3 + $0x26] sm:$0x1]  ;;  %v651_v56 = vld [vmem:[#allocation3 + $0x36] sm:$0x1] }
 0xb07   :  { %v671_v60 = vrot.slane %v651_v56, 2 }
 0xb08   :  { %581 = vrot.lane.b32.xlu1 %v548_v57, %s1014_s7  ;;  %v669_v57 = vrot.slane %v650_v53, 3 }
 0xb7a   :  { %v582_v16 = vpop.permute.xlu1 %581 }
 0xb7b   :  { %v584_v17 = vsel %vm102_vm7, %v578_v15, %v582_v16 }
 0xb7c   :  { %875 = vmatmul.msk.f32.vlgmr.msrb.gmra.mxu1 %vm104_vm8, %v584_v17 }
 0xbf9   :  { %v605_v18 = vpop.f32.mrf.mxu1 }
 0xbfa   :  { %v606_v19 = vadd.f32 %v1107_v30, %v605_v18 }
 0xbfc   :  { %932 = vtanh.f32 %v606_v19  ;;  %v876_v21 = vmul.f32 -1.442695, %v606_v19 }
 0xbfe   :  { %934 = vpow2.f32 %v876_v21 }
 0xc02   :  { %v933_v20 = vpop.eup %932 }
 0xc03   :  { %630 = vrot.lane.b32.xlu2 %v933_v20, %s1012_s6 }
 0xc04   :  { %v935_v22 = vpop.eup %934 }
 0xc05   :  { %v611_v23 = vadd.f32 1.0, %v935_v22 }
 0xc07   :  { %936 = vrcp.f32 %v611_v23  ;;  %v623_v29 = vand.u32 2147483648, %v611_v23  ;;  %vm617_vm9 = vweird.f32 %v611_v23  ;;  %v621_v31 = vand.u32 2147483647, %v611_v23 }
 0xc09   :  { %v624_v33 = vor.u32 1.1754944e-38, %v623_v29  ;;  %vm622_vm11 = vcmp.eq.f32.partialorder %v621_v31, 8.507059e+37  ;;  %v741_v31 = vld [vmem:[#allocation3 + $0x7] sm:$0x1] }
 0xc0d   :  { %v937_v24 = vpop.eup %936 }
 0xc0e   :  { %v613_v25 = vmul.f32 %v937_v24, %v611_v23  ;;  %vm618_vm15 = vweird.f32 %v937_v24 }
 0xc0f   :  { %vm619_vm10 = vmor %vm617_vm9, %vm618_vm15 }
 0xc10   :  { %v614_v26 = vsub.f32 1.0, %v613_v25 }
 0xc12   :  { %v615_v27 = vmul.f32 %v937_v24, %v614_v26 }
 0xc14   :  { %v616_v28 = vadd.f32 %v937_v24, %v615_v27  ;;  %v742_v27 = vld [vmem:[#allocation3 + $0xf] sm:$0x1] }
 0xc15   :  { %v757_v29 = vrot.slane %v742_v27, 7 }
 0xc16   :  { %v620_v32 = vsel %vm619_vm10, %v937_v24, %v616_v28  ;;  %v743_v28 = vld [vmem:[#allocation3 + $0x17] sm:$0x1] }
 0xc17   :  { %v625_v35 = vsel %vm622_vm11, %v624_v33, %v620_v32  ;;  %v744_v32 = vld [vmem:[#allocation3 + $0x1f] sm:$0x1]  ;;  %v759_v33 = vrot.slane %v743_v28, 6 }
 0xc18   :  { %v628_v37 = vmul.f32 %v625_v35, %v542_v54  ;;  %v667_v54 = vrot.slane %v649_v50, 4 }
 0xc1a   :  { %v668_v58 = vsel %vm90_vm3, %v667_v54, %v666_v55 }
 0xc1b   :  { %v670_v61 = vsel %vm93_vm4, %v669_v57, %v668_v58 }
 0xc1c   :  { %v672_v63 = vsel %vm96_vm5, %v671_v60, %v670_v61 }
 0xc1d   :  { %v674_v0 = vsel %vm99_vm6, %v673_v62, %v672_v63 }
 0xc5d   :  { %v631_v34 = vpop.permute.xlu2 %630 }
 0xc5e   :  { %v633_v36 = vmul.f32 %v631_v34, %v625_v35  ;;  %v758_v34 = vsel %vm81_vm0, %v757_v29, %v741_v31 }
 0xc60   :  { %635 = vrot.lane.b32.xlu0 %v633_v36, %s1013_s2  ;;  %v761_v36 = vrot.slane %v744_v32, 5 }
 0xcd2   :  { %v636_v38 = vpop.permute.xlu0 %635 }
 0xcd3   :  { %v638_v39 = vadd.f32 %v636_v38, %v628_v37  ;;  %v760_v37 = vsel %vm84_vm1, %v759_v33, %v758_v34  ;;  %v746_v38 = vld [vmem:[#allocation3 + $0x2f] sm:$0x1] }
 0xcd5   :  { %938 = vtanh.f32 %v638_v39 }
 0xcdb   :  { %v939_v40 = vpop.eup %938 }
 0xcdc   :  { %641 = vrot.lane.b32.xlu1 %v939_v40, %s1012_s6  ;;  %v762_v40 = vsel %vm87_vm2, %v761_v36, %v760_v37 }
 0xd4e   :  { %v642_v41 = vpop.permute.xlu1 %641 }
 0xd4f   :  { %v644_v42 = vmul.f32 %v642_v41, %v625_v35  ;;  %v745_v35 = vld [vmem:[#allocation3 + $0x27] sm:$0x1]  ;;  %v747_v41 = vld [vmem:[#allocation3 + $0x37] sm:$0x1] }
 0xd50   :  { %v767_v45 = vrot.slane %v747_v41, 2 }
 0xd51   :  { %677 = vrot.lane.b32.xlu2 %v644_v42, %s1014_s7  ;;  %v765_v42 = vrot.slane %v746_v38, 3 }
 0xdab   :  { %v678_v1 = vpop.permute.xlu2 %677 }
 0xdac   :  { %v680_v2 = vsel %vm102_vm7, %v674_v0, %v678_v1 }
 0xdad   :  { %877 = vmatmul.msk.f32.vlgmr.msrb.gmra.mxu2 %vm104_vm8, %v680_v2 }
 0xe30   :  { %v701_v3 = vpop.f32.mrf.mxu2 }
 0xe31   :  { %v702_v4 = vadd.f32 %v1107_v30, %v701_v3 }
 0xe33   :  { %940 = vtanh.f32 %v702_v4  ;;  %v878_v6 = vmul.f32 -1.442695, %v702_v4 }
 0xe35   :  { %942 = vpow2.f32 %v878_v6 }
 0xe39   :  { %v941_v5 = vpop.eup %940 }
 0xe3a   :  { %726 = vrot.lane.b32.xlu0 %v941_v5, %s1012_s6  ;;  %v890_v5 = vld [vmem:[%s1221_s3] ss:$0 sm:$0xff] }
 0xe3b   :  { %v943_v7 = vpop.eup %942 }
 0xe3c   :  { %v707_v8 = vadd.f32 1.0, %v943_v7 }
 0xe3e   :  { %944 = vrcp.f32 %v707_v8  ;;  %v719_v14 = vand.u32 2147483648, %v707_v8  ;;  %vm713_vm13 = vweird.f32 %v707_v8  ;;  %v717_v15 = vand.u32 2147483647, %v707_v8 }
 0xe40   :  { %v720_v17 = vor.u32 1.1754944e-38, %v719_v14  ;;  %vm718_vm15 = vcmp.eq.f32.partialorder %v717_v15, 8.507059e+37 }
 0xe44   :  { %v945_v9 = vpop.eup %944 }
 0xe45   :  { %v709_v10 = vmul.f32 %v945_v9, %v707_v8  ;;  %vm714_vm12 = vweird.f32 %v945_v9 }
 0xe46   :  { %vm715_vm14 = vmor %vm713_vm13, %vm714_vm12 }
 0xe47   :  { %v710_v11 = vsub.f32 1.0, %v709_v10 }
 0xe49   :  { %v711_v12 = vmul.f32 %v945_v9, %v710_v11 }
 0xe4b   :  { %v712_v13 = vadd.f32 %v945_v9, %v711_v12 }
 0xe4d   :  { %v716_v16 = vsel %vm715_vm14, %v945_v9, %v712_v13 }
 0xe4e   :  { %v721_v19 = vsel %vm718_vm15, %v720_v17, %v716_v16  ;;  %v891_v16 = vld [vmem:[#allocation2] ss:$0 sm:$0xff] }
 0xe4f   :  { %v724_v21 = vmul.f32 %v721_v19, %v638_v39  ;;  %v763_v39 = vrot.slane %v745_v35, 4 }
 0xe51   :  { %v764_v43 = vsel %vm90_vm3, %v763_v39, %v762_v40 }
 0xe52   :  { %v766_v46 = vsel %vm93_vm4, %v765_v42, %v764_v43  ;;  %vm848_vm4 = vcmask 261120  }
 0xe53   :  { %v768_v48 = vsel %vm96_vm5, %v767_v45, %v766_v46  ;;  %vm857_vm5 = vcmask 7168  }
 0xe54   :  { %v770_v49 = vsel %vm99_vm6, %v769_v47, %v768_v48 }
 0xeac   :  { %v727_v18 = vpop.permute.xlu0 %726 }
 0xead   :  { %v729_v20 = vmul.f32 %v727_v18, %v721_v19 }
 0xeaf   :  { %731 = vrot.lane.b32.xlu1 %v729_v20, %s1013_s2 }
 0xf21   :  { %v732_v22 = vpop.permute.xlu1 %731 }
 0xf22   :  { %v734_v23 = vadd.f32 %v732_v22, %v724_v21 }
 0xf24   :  { %946 = vtanh.f32 %v734_v23 }
 0xf2a   :  { %v947_v24 = vpop.eup %946 }
 0xf2b   :  { %737 = vrot.lane.b32.xlu2 %v947_v24, %s1012_s6 }
 0xf85   :  { %v738_v25 = vpop.permute.xlu2 %737 }
 0xf86   :  { %v740_v26 = vmul.f32 %v738_v25, %v721_v19 }
 0xf88   :  { %773 = vrot.lane.b32.xlu0 %v740_v26, %s1014_s7 }
 0xffa   :  { %v774_v50 = vpop.permute.xlu0 %773 }
 0xffb   :  { %v776_v51 = vsel %vm102_vm7, %v770_v49, %v774_v50 }
 0xffc   :  { %879 = vmatmul.msk.f32.vlgmr.msrb.gmra.mxu3 %vm104_vm8, %v776_v51 }
0x107f   :  { %v797_v52 = vpop.f32.mrf.mxu3 }
0x1080   :  { %v798_v53 = vadd.f32 %v1107_v30, %v797_v52 }
0x1082   :  { %948 = vtanh.f32 %v798_v53  ;;  %v880_v55 = vmul.f32 -1.442695, %v798_v53 }
0x1084   :  { %950 = vpow2.f32 %v880_v55 }
0x1088   :  { %v949_v54 = vpop.eup %948 }
0x1089   :  { %822 = vrot.lane.b32.xlu1 %v949_v54, %s1012_s6 }
0x108a   :  { %v951_v56 = vpop.eup %950 }
0x108b   :  { %v803_v57 = vadd.f32 1.0, %v951_v56 }
0x108d   :  { %952 = vrcp.f32 %v803_v57  ;;  %v815_v63 = vand.u32 2147483648, %v803_v57  ;;  %vm809_vm1 = vweird.f32 %v803_v57  ;;  %v813_v0 = vand.u32 2147483647, %v803_v57 }
0x108f   :  { %v816_v1 = vor.u32 1.1754944e-38, %v815_v63  ;;  %vm814_vm3 = vcmp.eq.f32.partialorder %v813_v0, 8.507059e+37 }
0x1091   :  { %840 = vrot.lane.b32.xlu1 %v890_v5, %s1015_s10 }
0x1093   :  { %v953_v58 = vpop.eup %952 }
0x1094   :  { %v805_v59 = vmul.f32 %v953_v58, %v803_v57  ;;  %vm810_vm0 = vweird.f32 %v953_v58 }
0x1095   :  { %vm811_vm2 = vmor %vm809_vm1, %vm810_vm0 }
0x1096   :  { %v806_v60 = vsub.f32 1.0, %v805_v59 }
0x1098   :  { %v807_v61 = vmul.f32 %v953_v58, %v806_v60 }
0x109a   :  { %v808_v62 = vadd.f32 %v953_v58, %v807_v61 }
0x109c   :  { %v812_v30 = vsel %vm811_vm2, %v953_v58, %v808_v62 }
0x109d   :  { %v817_v3 = vsel %vm814_vm3, %v816_v1, %v812_v30 }
0x109e   :  { %v820_v6 = vmul.f32 %v817_v3, %v734_v23 }
0x10fb   :  { %v823_v2 = vpop.permute.xlu1 %822 }
0x10fc   :  { %v825_v4 = vmul.f32 %v823_v2, %v817_v3 }
0x10fe   :  { %827 = vrot.lane.b32.xlu2 %v825_v4, %s1013_s2 }
0x1103   :  { %v841_v11 = vpop.permute.xlu1 %840 }
0x1158   :  { %v828_v7 = vpop.permute.xlu2 %827 }
0x1159   :  { %v830_v8 = vadd.f32 %v828_v7, %v820_v6 }
0x115b   :  { %954 = vtanh.f32 %v830_v8 }
0x1161   :  { %v955_v9 = vpop.eup %954 }
0x1162   :  { %833 = vrot.lane.b32.xlu0 %v955_v9, %s1012_s6 }
0x11d4   :  { %v834_v10 = vpop.permute.xlu0 %833 }
0x11d5   :  { %v836_v12 = vmul.f32 %v834_v10, %v817_v3 }
0x11d7   :  { %v843_v13 = vmul.f32 %v841_v11, %v836_v12 }
0x11d9   :  { %845 = vrot.lane.b32.xlu2 %v843_v13, %s1013_s2 }
0x1233   :  { %v846_v14 = vpop.permute.xlu2 %845 }
0x1234   :  { %v849_v15 = vsel %vm848_vm4, %v846_v14, 0.0 }
0x1235   :  { %850 = vadd.xlane.f32.xlu0 %v849_v15 }
0x12a8   :  { %v851_v17 = vpop.xlane.xlu0 %850 }
0x12a9   :  { %v856_v18 = vadd.f32 %v891_v16, %v851_v17 }
0x12ab   :  { %858 = vst.msk [vmem:[%s1223_s5] sm:$0xff] %vm857_vm5, %v856_v18 }
0x12ac   :  { %863 = vsyncpa [#allocation4], 1 }
0x12ad   :  { %864 = vsyncpa [#allocation6], 1 }

</bundles_post_ra>
